<compile_context>
chip_gen: v5e
topology: v5e:2x2
jax: 0.10.0
libtpu: 0.0.40
codegen_flags: <defaults>
</compile_context>

<pallas_src>
import functools

import jax
import jax.numpy as jnp
from jax.experimental import pallas as pl
from jax.experimental.pallas import tpu as pltpu


def _cs_prenorm_conv1x1_kernel(x_ref, w_ref, b_ref, o_ref, *, eps):
    """x_ref: (1, C, T) tile.  LayerNorm over C (sublane axis), then W @ x_hat."""
    x = x_ref[0].astype(jnp.float32)                       # (C, T)

    # CS_LayerNorm statistics over the channel axis (population variance).
    mean = jnp.mean(x, axis=0, keepdims=True)              # (1, T)
    centered = x - mean
    var = jnp.mean(centered * centered, axis=0, keepdims=True)
    x_hat = centered * jax.lax.rsqrt(var + eps)            # (C, T)

    # 1x1 conv; LayerNorm affine already folded into (w, b) on the host.
    y = jnp.dot(w_ref[...], x_hat, preferred_element_type=jnp.float32)
    y = y + b_ref[...]                                     # (C_out, 1) bcast over lanes
    o_ref[0] = y.astype(o_ref.dtype)


def _round_up(x, m):
    return (x + m - 1) // m * m


def cs_prenorm_conv1x1(x_nchw, g, b, conv_w, conv_b, *, eps=1e-5, max_tile_hw=2048):
    """CS_PreNorm(dim, Conv2d(dim, dim, 1)) forward.

    x_nchw: (B, C, H, W) f32.  g/b: (C,) LayerNorm affine.
    conv_w: (C_out, C_in) 1x1-conv weight.  conv_b: (C_out,).
    """
    B, C, H, W = x_nchw.shape
    C_out = conv_w.shape[0]
    HW = H * W

    # NCHW -> (B, C, H*W) is a pure reshape (no transpose, no extra HBM pass).
    x3d = x_nchw.reshape(B, C, HW)

    # Lane-dense tiling of the spatial axis: tile_hw is a multiple of 128.
    tile_hw = min(max_tile_hw, _round_up(HW, 128))
    HW_pad = _round_up(HW, tile_hw)
    if HW_pad != HW:
        # Padded pixels are independent (norm reduces over C); they are
        # computed and then sliced off, so they never pollute valid outputs.
        x3d = jnp.pad(x3d, ((0, 0), (0, 0), (0, HW_pad - HW)))
    n_hw_tiles = HW_pad // tile_hw

    # Fold the LayerNorm affine into the 1x1 conv (host side, once):
    #   W @ (x_hat * g + b) + cb == (W * g) @ x_hat + (W @ b + cb)
    w_eff = conv_w.astype(jnp.float32) * g.astype(jnp.float32)[None, :]
    b_eff = (conv_w.astype(jnp.float32) @ b.astype(jnp.float32)
             + conv_b.astype(jnp.float32)).reshape(C_out, 1)

    # VMEM budget: double-buffered x/out tiles + (small) weights, with headroom.
    tile_bytes = (C + C_out) * tile_hw * 4
    vmem_needed = 2 * tile_bytes + 2 * (C_out * C + C_out) * 4
    vmem_limit = int(min(64 << 20, max(2 * vmem_needed + (2 << 20), 16 << 20)))

    kernel = functools.partial(_cs_prenorm_conv1x1_kernel, eps=eps)

    out3d = pl.pallas_call(
        kernel,
        out_shape=jax.ShapeDtypeStruct((B, C_out, HW_pad), x_nchw.dtype),
        grid_spec=pltpu.PrefetchScalarGridSpec(
            num_scalar_prefetch=0,
            grid=(B, n_hw_tiles),
            in_specs=[
                pl.BlockSpec((1, C, tile_hw), lambda bi, j: (bi, 0, j)),  # x tile
                pl.BlockSpec((C_out, C), lambda bi, j: (0, 0)),           # folded weight
                pl.BlockSpec((C_out, 1), lambda bi, j: (0, 0)),           # folded bias
            ],
            out_specs=pl.BlockSpec((1, C_out, tile_hw), lambda bi, j: (bi, 0, j)),
        ),
        compiler_params=pltpu.CompilerParams(
            # Both axes independent -> v7x megacore can shard across 2 TCs.
            dimension_semantics=("parallel", "parallel"),
            vmem_limit_bytes=vmem_limit,
        ),
    )(x3d, w_eff, b_eff)

    if HW_pad != HW:
        out3d = out3d[:, :, :HW]
    return out3d.reshape(B, C_out, H, W)


def cs_prenorm_reference(x, g, b, conv_w, conv_b, eps=1e-5):
    # Pure-JAX reference matching the PyTorch semantics (NCHW, reduce over C).
    mean = jnp.mean(x, axis=1, keepdims=True)
    var = jnp.mean((x - mean) ** 2, axis=1, keepdims=True)  # unbiased=False
    xn = (x - mean) / jnp.sqrt(var + eps)
    xn = xn * g.reshape(1, -1, 1, 1) + b.reshape(1, -1, 1, 1)
    y = jnp.einsum("oc,bchw->bohw", conv_w, xn) + conv_b.reshape(1, -1, 1, 1)
    return y


if __name__ == "__main__":
    # Shapes consistent with the module entry (input_dim=32 channels).
    B, C, H, W = 2, 32, 16, 16
    key = jax.random.PRNGKey(0)
    kx, kw, kb, kg, kbb = jax.random.split(key, 5)

    x = jax.random.normal(kx, (B, C, H, W), dtype=jnp.float32)

    # CS_LayerNorm params (perturbed from the g=1 / b=0 init so the host-side
    # affine folding is actually exercised).
    g = 1.0 + 0.1 * jax.random.normal(kg, (C,), dtype=jnp.float32)
    b = 0.1 * jax.random.normal(kbb, (C,), dtype=jnp.float32)

    # Wrapped fn: 1x1 conv, deterministically initialized.
    conv_w = 0.05 * jax.random.normal(kw, (C, C), dtype=jnp.float32)
    conv_b = 0.05 * jax.random.normal(kb, (C,), dtype=jnp.float32)

    out = cs_prenorm_conv1x1(x, g, b, conv_w, conv_b)
    out = jax.block_until_ready(out)

    ref = cs_prenorm_reference(x, g, b, conv_w, conv_b)
    assert out.shape == (B, C, H, W)
    assert jnp.max(jnp.abs(out - ref)) < 1e-4

    print("KERNEL_OK")
</pallas_src>

<mosaic_0001>
module attributes {stable_mosaic.version = 11 : i64} {
  func.func @_cs_prenorm_conv1x1_kernel(%arg0: i32, %arg1: i32, %arg2: memref<1x32x256xf32, #tpu.memory_space<vmem>>, %arg3: memref<32x32xf32, #tpu.memory_space<vmem>>, %arg4: memref<32x1xf32, #tpu.memory_space<vmem>>, %arg5: memref<1x32x256xf32, #tpu.memory_space<vmem>>) attributes {dimension_semantics = [#tpu.dimension_semantics<parallel>, #tpu.dimension_semantics<parallel>], iteration_bounds = array<i64: 2, 1>, scalar_prefetch = 0 : i64, scratch_operands = 0 : i64, tpu.core_type = #tpu.core_type<tc>, window_params = [{transform_indices = @transform_0, window_bounds = array<i64: 1, 32, 256>}, {pipeline_mode = #tpu.pipeline_mode<synchronous>, transform_indices = @transform_1, window_bounds = array<i64: 32, 32>}, {pipeline_mode = #tpu.pipeline_mode<synchronous>, transform_indices = @transform_2, window_bounds = array<i64: 32, 1>}, {transform_indices = @transform_3, window_bounds = array<i64: 1, 32, 256>}]} {
    %c0 = arith.constant 0 : index
    %c0_0 = arith.constant 0 : index
    %c0_1 = arith.constant 0 : index
    %0 = vector.load %arg2[%c0, %c0_0, %c0_1] : memref<1x32x256xf32, #tpu.memory_space<vmem>>, vector<1x32x256xf32>
    %1 = vector.shape_cast %0 : vector<1x32x256xf32> to vector<32x256xf32>
    %cst = arith.constant dense<0.000000e+00> : vector<256xf32>
    %2 = vector.multi_reduction <add>, %1, %cst [0] : vector<32x256xf32> to vector<256xf32>
    %3 = vector.shape_cast %2 : vector<256xf32> to vector<1x256xf32>
    %cst_2 = arith.constant 3.200000e+01 : f32
    %4 = vector.broadcast %cst_2 : f32 to vector<1x256xf32>
    %5 = arith.divf %3, %4 : vector<1x256xf32>
    %6 = vector.broadcast %5 : vector<1x256xf32> to vector<32x256xf32>
    %7 = arith.subf %1, %6 : vector<32x256xf32>
    %8 = arith.mulf %7, %7 : vector<32x256xf32>
    %cst_3 = arith.constant dense<0.000000e+00> : vector<256xf32>
    %9 = vector.multi_reduction <add>, %8, %cst_3 [0] : vector<32x256xf32> to vector<256xf32>
    %10 = vector.shape_cast %9 : vector<256xf32> to vector<1x256xf32>
    %cst_4 = arith.constant 3.200000e+01 : f32
    %11 = vector.broadcast %cst_4 : f32 to vector<1x256xf32>
    %12 = arith.divf %10, %11 : vector<1x256xf32>
    %cst_5 = arith.constant 9.99999974E-6 : f32
    %13 = vector.broadcast %cst_5 : f32 to vector<1x256xf32>
    %14 = arith.addf %12, %13 : vector<1x256xf32>
    %15 = math.rsqrt %14 : vector<1x256xf32>
    %16 = vector.broadcast %15 : vector<1x256xf32> to vector<32x256xf32>
    %17 = arith.mulf %7, %16 : vector<32x256xf32>
    %c0_6 = arith.constant 0 : index
    %c0_7 = arith.constant 0 : index
    %18 = vector.load %arg3[%c0_6, %c0_7] : memref<32x32xf32, #tpu.memory_space<vmem>>, vector<32x32xf32>
    %cst_8 = arith.constant dense<0.000000e+00> : vector<32x256xf32>
    %19 = tpu.matmul %18, %17, %cst_8 {dimension_numbers = #tpu.dot_dimension_numbers<[1], [0], [0], [1], [0, 0, 1, 1], [], []>} : vector<32x32xf32>, vector<32x256xf32>, vector<32x256xf32> -> vector<32x256xf32>
    %c0_9 = arith.constant 0 : index
    %c0_10 = arith.constant 0 : index
    %20 = vector.load %arg4[%c0_9, %c0_10] : memref<32x1xf32, #tpu.memory_space<vmem>>, vector<32x1xf32>
    %21 = vector.broadcast %20 : vector<32x1xf32> to vector<32x256xf32>
    %22 = arith.addf %19, %21 : vector<32x256xf32>
    %c0_11 = arith.constant 0 : index
    %c0_12 = arith.constant 0 : index
    %c0_13 = arith.constant 0 : index
    %23 = vector.load %arg5[%c0_11, %c0_12, %c0_13] : memref<1x32x256xf32, #tpu.memory_space<vmem>>, vector<1x32x256xf32>
    %24 = vector.shape_cast %23 : vector<1x32x256xf32> to vector<32x256xf32>
    %25 = vector.shape_cast %22 : vector<32x256xf32> to vector<1x32x256xf32>
    tpu.vector_store %arg5[%c0_11, %c0_12, %c0_13], %25 {strides = array<i32>} : memref<1x32x256xf32, #tpu.memory_space<vmem>>, vector<1x32x256xf32>,
    return
  }
  func.func @transform_0(%arg0: i32, %arg1: i32) -> (i32, i32, i32) {
    %c0_i32 = arith.constant 0 : i32
    %c0_i32_0 = arith.constant 0 : i32
    return %arg0, %c0_i32, %arg1 : i32, i32, i32
  }
  func.func @transform_1(%arg0: i32, %arg1: i32) -> (i32, i32) {
    %c0_i32 = arith.constant 0 : i32
    %c0_i32_0 = arith.constant 0 : i32
    %c0_i32_1 = arith.constant 0 : i32
    return %c0_i32, %c0_i32_0 : i32, i32
  }
  func.func @transform_2(%arg0: i32, %arg1: i32) -> (i32, i32) {
    %c0_i32 = arith.constant 0 : i32
    %c0_i32_0 = arith.constant 0 : i32
    %c0_i32_1 = arith.constant 0 : i32
    return %c0_i32, %c0_i32_0 : i32, i32
  }
  func.func @transform_3(%arg0: i32, %arg1: i32) -> (i32, i32, i32) {
    %c0_i32 = arith.constant 0 : i32
    %c0_i32_0 = arith.constant 0 : i32
    return %arg0, %c0_i32, %arg1 : i32, i32, i32
  }
}

</mosaic_0001>

<bundles_post_ra>
// kernel: tpu_custom_call.1
= control target key start
LH: loop header
LB: loop body
LE: loop exit
PB: predicated region body
PF: predicated region fallthrough
CT: control target
= control target key end

     0   :  { %8 = vsyncpa [#allocation3], 0  ;;  %s961_s0 = inlined_call_operand.hbm [shape: f32[2,32,256], index: 0, kind: input, shape index: {}]   ;;  %s962_s1 = inlined_call_operand.vmem [shape: f32[32,32], index: 1, kind: input, shape index: {}]   ;;  %s963_s2 = inlined_call_operand.vmem [shape: f32[32,1], index: 2, kind: input, shape index: {}]   ;;  %s964_s3 = inlined_call_operand.hbm [shape: f32[2,32,256], index: 3, kind: output, shape index: {}]  }
   0x1   :  { %10 = vsyncpa [#allocation3 + $0x1], 0 }
   0x2   :  { %11 = vsyncpa [#allocation4], 0 }
   0x3   :  { %13 = vsyncpa [#allocation4 + $0x1], 0  ;;  %s773_s12 = smov 0   ;;  %s775_s13 = smov 0  }
   0x4   :  { %s777_s14 = smov 0   ;;  %s779_s15 = smov 0  }
   0x5   :  { %s781_s16 = smov 0   ;;  %s783_s17 = smov 0  }
   0x6 LB: > { %s524_s18 = sadd.s32 4294967295, %s745_s17   ;;  %s525_s19 = sadd.s32 4294967294, %s745_s17   ;;  %s745_s17 = sphi %s783_s17, %s19_s17   ;;  %s741_s16 = sphi %s781_s16, %s973_s16   ;;  %s737_s15 = sphi %s779_s15, %s972_s15   ;;  %s733_s14 = sphi %s777_s14, %s971_s14   ;;  %s729_s13 = sphi %s775_s13, %s970_s13   ;;  %s725_s12 = sphi %s773_s12, %s969_s12  }
   0x7   : > { %s31_s20 = sadd.s32 1, %s741_s16  ;;  %s40_s21 = sadd.s32 1, %s733_s14 }
   0x8   : > { %p33_p0 = scmp.ge.s32.totalorder %s31_s20, 2  ;;  %p47_p1 = scmp.ne.s32.totalorder %s733_s14, %s729_s13 }
   0x9   : > { %p48_p2 = scmp.eq.s32.totalorder %s745_s17, 0  ;;  %p53_p3 = scmp.ne.s32.totalorder %s729_s13, %s725_s12 }
   0xa   : > { %s975_s20 = smov (%p33_p0, %s31_s20), 0  ;;  %p54_p5 = scmp.eq.s32.totalorder %s524_s18, 0 }
   0xb   : > { %p814_p4 = por %p48_p2, %p47_p1  ;;  %s35_s23 = ssub.s32 %s741_s16, %s975_s20 }
   0xc   : > { %p121_p6 = scmp.eq.s32.totalorder %s524_s18, 1  ;;  %p38_p7 = scmp.eq.s32.totalorder %s35_s23, 0 }
   0xd   : > { %p820_p8 = por %p54_p5, %p53_p3  ;;  %p127_p10 = scmp.eq.s32.totalorder %s525_s19, 1 }
   0xe   : > { %p824_p9 = por %p121_p6, %p47_p1  ;;  %p527_p12 = scmp.ge.s32.totalorder %s745_s17, 2 }
   0xf   : > { %s829_s26 = scalar_select %p38_p7, %s733_s14, %s40_s21  }
  0x10   : > { %p831_p11 = por %p127_p10, %p53_p3  ;;  %p569_p13 = scmp.lt.s32.totalorder %s745_s17, 2 }
  0x11   : > { %s153_s28 = sand.u32 1, %s733_s14   ;;  %s547_s30 = sshll.u32 %s741_s16, 6 }
  0x12   : > { %s528_s29 = sshll.u32 %s153_s28, 6  ;;  %s164_s6 = scalar_lea.hbm %s961_s0, %s547_s30 }
  0x13   : > { %s157_s7 = scalar_lea.vmem [#allocation2], %s528_s29  ;;  %s165_s9 = sshll.u32 %s164_s6, 4  ;;  %s166_s9 = int_to_ptr.hbm [resolvable:$true] %s165_s9 }
  0x14   : > { %s167_s8 = sshll.u32 %s157_s7, 4  ;;  %p562_p0 = pnand %p569_p13, %p814_p4  ;;  %s168_s8 = int_to_ptr.vmem [resolvable:$true] %s167_s8 }
  0x15   : > { %p531_p1 = scmp.ge.s32.totalorder %s745_s17, 1  ;;  %s154_s10 = scalar_lea.sflag [#allocation3], %s153_s28 }
  0x16   : > { %s747_s11 = smov 256   ;;  %s748_s18 = smov 16  }
  0x17   : > { %564 = dma.hbm_to_vmem [thread:$0]  (!%p562_p0), %s166_s9, 1024, %s168_s8, %s154_s10, %s747_s11, %s747_s11, %s748_s18  }
  0x18   : > { %p175_p2 = scmp.lt.s32.totalorder %s745_s17, 3 }
  0x1a   : > { %p176_p3 = pnand %p531_p1, %p175_p2 }
  0x1b   : > { %s847_s19 = sand.u32 (!%p176_p3), 1, %s729_s13  }
  0x1c   : > { %179 = sbr.rel (%p176_p3) target bundleno = 256 (0x100), region = 32  ;;  %s532_s21 = sshll.u32 (!%p176_p3), %s847_s19, 6 }
  0x1d   : > { %s182_s23 = scalar_lea.sflag (!%p176_p3), [#allocation3], %s847_s19  ;;  %s185_s22 = scalar_lea.vmem (!%p176_p3), [#allocation2], %s532_s21 }
  0x21   : > { %716 = dma.done.wait (%p820_p8), %s182_s23, 1024  }
  0x22   : > { %718 = vsyncadd (%p820_p8), %s182_s23, 4294966272  ;;  %v749_v0 = vmov 32.0   ;;  %v211_v2 = vld [vmem:[%s185_s22] sm:$0xff]  ;;  %v213_v3 = vld [vmem:[%s185_s22 + $0x10] sm:$0xff]  ;;  %vm340_vm7 = vcmask 261120   ;;  %s208_s28 = scalar_lea.vmem [#allocation5], %s532_s21 }
  0x23   : > { %627 = vrcp.f32 %v749_v0  ;;  %v215_v4 = vld [vmem:[%s185_s22 + $0x20] sm:$0xff]  ;;  %v219_v5 = vadd.f32 %v213_v3, %v211_v2  ;;  %v212_v7 = vld [vmem:[%s185_s22 + $0x8] sm:$0xff]  ;;  %v214_v8 = vld [vmem:[%s185_s22 + $0x18] sm:$0xff]  ;;  %s548_s29 = sshll.u32 %s737_s15, 6  ;;  %s434_s21 = sshll.u32 %s208_s28, 4  ;;  %s435_s21 = int_to_ptr.vmem [resolvable:$true] %s434_s21 }
  0x24   : > { %v217_v9 = vld [vmem:[%s185_s22 + $0x30] sm:$0xff]  ;;  %v216_v10 = vld [vmem:[%s185_s22 + $0x28] sm:$0xff]  ;;  %v228_v11 = vadd.f32 %v214_v8, %v212_v7  ;;  %v218_v13 = vld [vmem:[%s185_s22 + $0x38] sm:$0xff]  ;;  %s433_s5 = scalar_lea.hbm %s964_s3, %s548_s29  ;;  %s420_s6 = scalar_lea.sflag [#allocation4], %s847_s19 }
  0x25   : > { %v220_v12 = vadd.f32 %v219_v5, %v215_v4  ;;  %s436_s15 = sshll.u32 %s433_s5, 4  ;;  %s683_s11 = scalar_lea.hbm %s964_s3, 128  ;;  %s437_s15 = int_to_ptr.hbm [resolvable:$true] %s436_s15 }
  0x26   : > { %v229_v15 = vadd.f32 %v228_v11, %v216_v10  ;;  %v316_v11 = vld [vmem:[%s963_s2] sm:$0xff]  ;;  %s677_s7 = sshra.s32 %s437_s15, 4  ;;  %s678_s7 = int_to_ptr.hbm [resolvable:$true] %s677_s7 }
  0x27   : > { %v221_v16 = vadd.f32 %v220_v12, %v217_v9  ;;  %s679_s8 = scalar_lea.hbm %s678_s7, 64  ;;  %p684_p7 = scmp.lt.s32.totalorder %s678_s7, %s964_s3 }
  0x28   : > { %v230_v17 = vadd.f32 %v229_v15, %v218_v13  ;;  %p680_p4 = scmp.ne.s32.totalorder %s678_s7, %s679_s8  ;;  %p685_p8 = scmp.lt.s32.totalorder %s683_s11, %s679_s8 }
  0x29   : > { %v628_v1 = vpop.eup %627  ;;  %v222_v18 = vrot.slane %v221_v16, 4 }
  0x2a   : > { %v238_v6 = vmul.f32 32.0, %v628_v1  ;;  %v231_v20 = vrot.slane %v230_v17, 4  ;;  %vm242_vm0 = vweird.f32 %v628_v1  ;;  %p681_p5 = pnand %p680_p4, %p824_p9  ;;  %p686_p10 = por %p685_p8, %p684_p7 }
  0x2b   : > { %v223_v21 = vadd.f32 %v222_v18, %v221_v16 }
  0x2c   : > { %v239_v14 = vsub.f32 1.0, %v238_v6  ;;  %v232_v22 = vadd.f32 %v231_v20, %v230_v17  ;;  %v317_v20 = vld [vmem:[%s963_s2 + $0x8] sm:$0xff]  ;;  %p682_p6 = pneg %p681_p5 }
  0x2d   : > { %v224_v23 = vrot.slane %v223_v21, 2 }
  0x2e   : > { %v240_v19 = vmul.f32 %v628_v1, %v239_v14  ;;  %v233_v25 = vrot.slane %v232_v22, 2  ;;  %p687_p13 = pnand %p686_p10, %p682_p6 }
  0x2f   : > { %v225_v26 = vadd.f32 %v224_v23, %v223_v21 }
  0x30   : > { %v241_v24 = vadd.f32 %v628_v1, %v240_v19  ;;  %v234_v27 = vadd.f32 %v233_v25, %v232_v22  ;;  %v319_v19 = vld [vmem:[%s963_s2 + $0x18] sm:$0xff] }
  0x31   : > { %v226_v28 = vrot.slane %v225_v26, 1 }
  0x32   : > { %v243_v29 = vsel %vm242_vm0, %v628_v1, %v241_v24  ;;  %v235_v30 = vrot.slane %v234_v27, 1 }
  0x33   : > { %v227_v31 = vadd.f32 %v226_v28, %v225_v26 }
  0x34   : > { %v236_v32 = vadd.f32 %v235_v30, %v234_v27 }
  0x35   : > { %v244_v33 = vmul.f32 %v243_v29, %v227_v31 }
  0x36   : > { %v245_v34 = vmul.f32 %v243_v29, %v236_v32 }
  0x37   : > { %v857_v35 = vsub.f32 %v211_v2, %v244_v33  ;;  %v859_v36 = vsub.f32 %v213_v3, %v244_v33  ;;  %v861_v37 = vsub.f32 %v215_v4, %v244_v33  ;;  %v863_v38 = vsub.f32 %v217_v9, %v244_v33 }
  0x38   : > { %v865_v39 = vsub.f32 %v212_v7, %v245_v34  ;;  %v867_v40 = vsub.f32 %v214_v8, %v245_v34  ;;  %v869_v41 = vsub.f32 %v216_v10, %v245_v34  ;;  %v871_v42 = vsub.f32 %v218_v13, %v245_v34  ;;  %v318_v10 = vld [vmem:[%s963_s2 + $0x10] sm:$0xff] }
  0x39   : > { %v254_v43 = vmul.f32 %v857_v35, %v857_v35  ;;  %v256_v44 = vmul.f32 %v859_v36, %v859_v36  ;;  %v258_v45 = vmul.f32 %v861_v37, %v861_v37  ;;  %v260_v49 = vmul.f32 %v863_v38, %v863_v38 }
  0x3a   : > { %v255_v46 = vmul.f32 %v865_v39, %v865_v39  ;;  %v257_v47 = vmul.f32 %v867_v40, %v867_v40  ;;  %v259_v48 = vmul.f32 %v869_v41, %v869_v41  ;;  %v261_v51 = vmul.f32 %v871_v42, %v871_v42 }
  0x3b   : > { %v262_v50 = vadd.f32 %v256_v44, %v254_v43  ;;  %v750_v8 = vmov 0  }
  0x3c   : > { %v271_v52 = vadd.f32 %v257_v47, %v255_v46  ;;  %626 = vset.pattern.permute.xlu1 %v750_v8  ;;  %625 = vset.pattern.permute.xlu0 %v750_v8 }
  0x3d   : > { %v263_v53 = vadd.f32 %v262_v50, %v258_v45  ;;  %332 = vperm.xlu1 %626, %v318_v10   ;;  %322 = vperm.xlu0 %625, %v316_v11  }
  0x3e   : > { %v272_v54 = vadd.f32 %v271_v52, %v259_v48 }
  0x3f   : > { %v264_v55 = vadd.f32 %v263_v53, %v260_v49 }
  0x40   : > { %v273_v56 = vadd.f32 %v272_v54, %v261_v51 }
  0x41   : > { %v265_v57 = vrot.slane %v264_v55, 4 }
  0x42   : > { %v274_v58 = vrot.slane %v273_v56, 4 }
  0x43   : > { %v266_v59 = vadd.f32 %v265_v57, %v264_v55 }
  0x44   : > { %v275_v60 = vadd.f32 %v274_v58, %v273_v56 }
  0x45   : > { %v267_v61 = vrot.slane %v266_v59, 2  ;;  %337 = vperm.xlu1 %626, %v319_v19   ;;  %327 = vperm.xlu0 %625, %v317_v20  }
  0x46   : > { %v276_v62 = vrot.slane %v275_v60, 2 }
  0x47   : > { %v268_v63 = vadd.f32 %v267_v61, %v266_v59 }
  0x48   : > { %v277_v0 = vadd.f32 %v276_v62, %v275_v60 }
  0x49   : > { %v269_v1 = vrot.slane %v268_v63, 1 }
  0x4a   : > { %v278_v2 = vrot.slane %v277_v0, 1 }
  0x4b   : > { %v270_v3 = vadd.f32 %v269_v1, %v268_v63 }
  0x4c   : > { %v279_v4 = vadd.f32 %v278_v2, %v277_v0 }
  0x4d   : > { %v280_v5 = vmul.f32 %v270_v3, %v243_v29 }
  0x4e   : > { %v281_v6 = vmul.f32 %v279_v4, %v243_v29 }
  0x4f   : > { %v282_v7 = vadd.f32 1e-05, %v280_v5 }
  0x50   : > { %v283_v9 = vadd.f32 1e-05, %v281_v6 }
  0x51   : > { %629 = vrsqrt.f32 %v282_v7  ;;  %vm290_vm1 = vweird.f32 %v282_v7 }
  0x52   : > { %631 = vrsqrt.f32 %v283_v9  ;;  %vm300_vm3 = vweird.f32 %v283_v9 }
  0x57   : > { %v630_v12 = vpop.eup %629 }
  0x58   : > { %v632_v13 = vpop.eup %631  ;;  %v285_v14 = vmul.f32 %v630_v12, %v282_v7  ;;  %vm291_vm2 = vweird.f32 %v630_v12 }
  0x59   : > { %v295_v15 = vmul.f32 %v632_v13, %v283_v9  ;;  %vm301_vm4 = vweird.f32 %v632_v13  ;;  %vm292_vm5 = vmor %vm290_vm1, %vm291_vm2 }
  0x5a   : > { %v286_v16 = vmul.f32 %v630_v12, %v285_v14  ;;  %vm302_vm6 = vmor %vm300_vm3, %vm301_vm4 }
  0x5b   : > { %v296_v17 = vmul.f32 %v632_v13, %v295_v15 }
  0x5c   : > { %v287_v18 = vmul.f32 0.5, %v286_v16 }
  0x5d   : > { %v297_v21 = vmul.f32 0.5, %v296_v17 }
  0x5e   : > { %v288_v22 = vsub.f32 1.5, %v287_v18 }
  0x5f   : > { %v298_v23 = vsub.f32 1.5, %v297_v21 }
  0x60   : > { %v289_v24 = vmul.f32 %v630_v12, %v288_v22 }
  0x61   : > { %v299_v25 = vmul.f32 %v632_v13, %v298_v23 }
  0x62   : > { %v293_v26 = vsel %vm292_vm5, %v630_v12, %v289_v24 }
  0x63   : > { %v310_v27 = vmul.f32 %v293_v26, %v863_v38  ;;  %v303_v28 = vsel %vm302_vm6, %v632_v13, %v299_v25  ;;  %v308_v29 = vmul.f32 %v293_v26, %v861_v37  ;;  %v306_v32 = vmul.f32 %v293_v26, %v859_v36  ;;  %v312_v36 = vld [vmem:[%s962_s1] sm:$0xff]  ;;  %v314_v38 = vld [vmem:[%s962_s1 + $0x10] sm:$0xff] }
  0x64   : > { %v311_v30 = vmul.f32 %v303_v28, %v871_v42  ;;  %v309_v31 = vmul.f32 %v303_v28, %v869_v41  ;;  %v307_v33 = vmul.f32 %v303_v28, %v867_v40  ;;  %v304_v34 = vmul.f32 %v293_v26, %v857_v35  ;;  %v313_v35 = vld [vmem:[%s962_s1 + $0x8] sm:$0xff] }
  0x65   : > { %365 = vmatpush.msra.mxu0 %v310_v27  ;;  %549 = vmatpush.msra.mxu2 %v310_v27  ;;  %v305_v37 = vmul.f32 %v303_v28, %v865_v39  ;;  %v315_v39 = vld [vmem:[%s962_s1 + $0x18] sm:$0xff] }
  0x66   : > { %394 = vmatpush.msra.mxu1 %v311_v30  ;;  %553 = vmatpush.msra.mxu3 %v311_v30 }
  0x67   : > { %366 = vmatpush.msra.mxu0 %v308_v29  ;;  %550 = vmatpush.msra.mxu2 %v308_v29 }
  0x68   : > { %395 = vmatpush.msra.mxu1 %v309_v31  ;;  %554 = vmatpush.msra.mxu3 %v309_v31 }
  0x69   : > { %367 = vmatpush.msra.mxu0 %v306_v32  ;;  %551 = vmatpush.msra.mxu2 %v306_v32 }
  0x6a   : > { %396 = vmatpush.msra.mxu1 %v307_v33  ;;  %555 = vmatpush.msra.mxu3 %v307_v33 }
  0x6b   : > { %368 = vmatpush.msra.mxu0 %v304_v34  ;;  %552 = vmatpush.msra.mxu2 %v304_v34 }
  0x6c   : > { %397 = vmatpush.msra.mxu1 %v305_v37  ;;  %556 = vmatpush.msra.mxu3 %v305_v37 }
  0x6d   : > { %534 = vmatmul.msk.f32.vlgmr.msra.gmra.mxu0 %vm340_vm7, %v312_v36  ;;  %536 = vmatmul.msk.f32.vlgmr.msra.gmra.mxu2 %vm340_vm7, %v314_v38 }
  0x6e   : > { %538 = vmatmul.msk.f32.vlgmr.msra.gmra.mxu1 %vm340_vm7, %v312_v36  ;;  %540 = vmatmul.msk.f32.vlgmr.msra.gmra.mxu3 %vm340_vm7, %v314_v38 }
  0x75   : > { %535 = vmatmul.msk.f32.gmra.mxu0 %vm340_vm7, %v313_v35  ;;  %537 = vmatmul.msk.f32.gmra.mxu2 %vm340_vm7, %v315_v39 }
  0x76   : > { %539 = vmatmul.msk.f32.gmra.mxu1 %vm340_vm7, %v313_v35  ;;  %541 = vmatmul.msk.f32.gmra.mxu3 %vm340_vm7, %v315_v39 }
  0xaf   : > { %v323_v40 = vpop.permute.xlu0 %322  ;;  %v333_v45 = vpop.permute.xlu1 %332 }
  0xb7   : > { %v328_v49 = vpop.permute.xlu0 %327  ;;  %v338_v55 = vpop.permute.xlu1 %337 }
  0xea   : > { %v370_v41 = vpop.f32.mrf.mxu0 }
  0xeb   : > { %v371_v42 = vadd.f32 %v370_v41, %v323_v40  ;;  %v399_v43 = vpop.f32.mrf.mxu1 }
  0xec   : > { %v400_v44 = vadd.f32 %v399_v43, %v323_v40 }
  0xed   : > { %411 = vst [vmem:[%s208_s28] sm:$0xff] %v371_v42 }
  0xee   : > { %412 = vst [vmem:[%s208_s28 + $0x8] sm:$0xff] %v400_v44 }
  0xf0   : > { %v376_v46 = vpop.f32.mrf.mxu2 }
  0xf1   : > { %v377_v47 = vadd.f32 %v376_v46, %v333_v45  ;;  %v405_v48 = vpop.f32.mrf.mxu3 }
  0xf2   : > { %v406_v50 = vadd.f32 %v405_v48, %v333_v45  ;;  %v373_v51 = vpop.f32.mrf.mxu0 }
  0xf3   : > { %415 = vst [vmem:[%s208_s28 + $0x20] sm:$0xff] %v377_v47  ;;  %v374_v52 = vadd.f32 %v373_v51, %v328_v49  ;;  %v402_v53 = vpop.f32.mrf.mxu1 }
  0xf4   : > { %416 = vst [vmem:[%s208_s28 + $0x28] sm:$0xff] %v406_v50  ;;  %v403_v54 = vadd.f32 %v402_v53, %v328_v49 }
  0xf5   : > { %413 = vst [vmem:[%s208_s28 + $0x10] sm:$0xff] %v374_v52 }
  0xf6   : > { %414 = vst [vmem:[%s208_s28 + $0x18] sm:$0xff] %v403_v54 }
  0xf8   : > { %v379_v56 = vpop.f32.mrf.mxu2 }
  0xf9   : > { %v380_v57 = vadd.f32 %v379_v56, %v338_v55  ;;  %v408_v58 = vpop.f32.mrf.mxu3 }
  0xfa   : > { %v409_v59 = vadd.f32 %v408_v58, %v338_v55 }
  0xfb   : > { %417 = vst [vmem:[%s208_s28 + $0x30] sm:$0xff] %v380_v57 }
  0xfc   : > { %418 = vst [vmem:[%s208_s28 + $0x38] sm:$0xff] %v409_v59 }
  0xfd   : > { %690 = shalt.err (!%p687_p13)
}
  0xfe   : > { %s751_s19 = smov 256   ;;  %s752_s22 = smov 16  }
  0xff   : > { %559 = dma.vmem_to_hbm [thread:$0]  (%p824_p9), %s435_s21, 1024, %s437_s15, %s420_s6, %s751_s19, %s751_s19, %s752_s22  }
 0x100 PF: > { %s451_s24 = sand.u32 1, %s725_s12   ;;  %p566_p0 = pnand %p527_p12, %p831_p11 }
 0x101   : > { %s452_s28 = scalar_lea.sflag [#allocation4], %s451_s24 }
 0x102   : > { %p567_p1 = pneg %p566_p0 }
 0x104   : > { %720 = dma.done.wait (%p567_p1), %s452_s28, 1024  }
 0x105   : > { %722 = vsyncadd (%p567_p1), %s452_s28, 4294966272  ;;  %s19_s17 = sadd.s32 1, %s745_s17   ;;  %s969_s12 = smov %s729_s13 }
 0x106   : > { %p16_p2 = scmp.ge.s32.totalorder %s19_s17, 4   ;;  %s970_s13 = smov %s733_s14 }
 0x107   : > { %s971_s14 = smov %s829_s26  ;;  %s972_s15 = smov %s741_s16 }
 0x108   : > { %s973_s16 = smov %s975_s20  ;;  %18 = sbr.rel (!%p16_p2) target bundleno = 6 (0x6), region = 77 }
 0x10d   :  { %458 = vsyncpa [#allocation3], 1 }
 0x10e   :  { %460 = vsyncpa [#allocation3 + $0x1], 1 }
 0x10f   :  { %461 = vsyncpa [#allocation4], 1 }
 0x110   :  { %463 = vsyncpa [#allocation4 + $0x1], 1 }

</bundles_post_ra>
